<compile_context>
chip_gen: v5e
topology: v5e:2x2
jax: 0.10.0
libtpu: 0.0.40
codegen_flags: <defaults>
</compile_context>

<pallas_src>
import string

import jax
import jax.numpy as jnp
from jax.experimental import pallas as pl
from jax.experimental.pallas import tpu as pltpu

all_letters = string.ascii_letters + " .,;'"
n_letters = len(all_letters)          # 57
n_hidden = 128
n_categories = 18                     # e.g. number of language classes

NL_PAD = 128                          # n_letters padded to a full lane width
C_PAD = 128                           # n_categories padded to a full lane width
NEG_INF = -1e30                       # "minus infinity" bias for padded logits


# ----------------------------------------------------------------------------
# Kernel: whole sequence in one invocation, hidden state carried in vregs.
# ----------------------------------------------------------------------------
def rnn_seq_kernel(idx_ref, wi_ref, wh_ref, b_ref, wo_ref, bo_ref,
                   out_ref, h_out_ref):
    B, H = h_out_ref.shape
    TB = idx_ref.shape[0]
    T = TB // B

    # ---- hoisted input projection: all T*B one-hots through the MXU at once.
    idx_col = idx_ref[...]                                     # [T*B, 1] int32
    lane = jax.lax.broadcasted_iota(jnp.int32, (TB, NL_PAD), 1)
    one_hot = (lane == idx_col).astype(jnp.float32)            # [T*B, NL_PAD]
    # xw_all[t*B + b] = one_hot @ Wi + (bi + bh) ; bias folded in here so the
    # serial loop body is a single K=128 matmul + add + tanh.
    xw_all = (jnp.dot(one_hot, wi_ref[...], preferred_element_type=jnp.float32)
              + b_ref[...])                                    # [T*B, H]

    # ---- serial recurrence, hidden state as a loop-carried value (vregs).
    # TODO(synk): store Wh/Wo in bf16 and cast h to bf16 before the dot on
    # v6e/v7x (f32 accumulate) for lower per-step MXU latency; kept f32 here
    # so the f32 reference check stays tight.
    wh = wh_ref[...]                                           # [H, H], hoisted
    h = jnp.zeros((B, H), jnp.float32)                         # initHidden()
    for t in range(T):                                         # trace-time unroll
        xw_t = xw_all[t * B:(t + 1) * B, :]                    # aligned static slice
        h = jnp.tanh(xw_t + jnp.dot(h, wh, preferred_element_type=jnp.float32))

    # ---- final classification head + log-softmax (f32).
    logits = (jnp.dot(h, wo_ref[...], preferred_element_type=jnp.float32)
              + bo_ref[...])                                   # [B, C_PAD]
    m = jnp.max(logits, axis=1, keepdims=True)
    lse = m + jnp.log(jnp.sum(jnp.exp(logits - m), axis=1, keepdims=True))
    out_ref[...] = logits - lse
    h_out_ref[...] = h


def _rnn_forward(idx, wi, bi, wh, bh, wo, bo):
    """idx: [T, B] int32 letter indices. Returns (log_probs [B, n_cat], h [B, H])."""
    T, B = idx.shape
    H = n_hidden

    # Pad / fuse parameters (tiny, traced once under jit).
    wi_pad = jnp.zeros((NL_PAD, H), jnp.float32).at[:n_letters].set(wi)
    b_fused = (bi + bh).reshape(1, H)
    wo_pad = jnp.zeros((H, C_PAD), jnp.float32).at[:, :n_categories].set(wo)
    bo_pad = jnp.full((1, C_PAD), NEG_INF, jnp.float32).at[:, :n_categories].set(bo)

    # Flatten indices to [T*B, 1] (row t*B + b  <->  time t, batch b).
    idx2 = idx.astype(jnp.int32).reshape(T * B, 1)

    vmem = pl.BlockSpec(memory_space=pltpu.MemorySpace.VMEM)   # whole array, resident

    out_pad, h_out = pl.pallas_call(
        rnn_seq_kernel,
        out_shape=(
            jax.ShapeDtypeStruct((B, C_PAD), jnp.float32),     # padded log-probs
            jax.ShapeDtypeStruct((B, H), jnp.float32),         # final hidden
        ),
        in_specs=[vmem, vmem, vmem, vmem, vmem, vmem],
        out_specs=(vmem, vmem),
    )(idx2, wi_pad, wh, b_fused, wo_pad, bo_pad)

    return out_pad[:, :n_categories], h_out


rnn_forward = jax.jit(_rnn_forward)

# TODO(synk): on v7x, if the deployment batch grows (B >= 128+), add a leading
# batch grid axis marked "parallel" so both TensorCores share the work; at B=8
# a single invocation with no grid is strictly faster.


# ----------------------------------------------------------------------------
# Parameter init (PyTorch nn.Linear style) + letter helpers
# ----------------------------------------------------------------------------
def init_linear(key, in_features, out_features):
    kw, kb = jax.random.split(key)
    bound = 1.0 / (in_features ** 0.5)
    # stored as [in, out] (transposed vs. PyTorch's [out, in]) for x @ W
    w = jax.random.uniform(kw, (in_features, out_features), jnp.float32, -bound, bound)
    b = jax.random.uniform(kb, (1, out_features), jnp.float32, -bound, bound)
    return w, b


def letter_to_index(letter):
    return all_letters.find(letter)


def line_to_indices(line):
    # replaces lineToTensor: letter indices instead of one-hot rows, shape [T, 1]
    ids = [letter_to_index(c) for c in line]
    assert all(i >= 0 for i in ids), "character not in all_letters"
    return jnp.array([[i] for i in ids], jnp.int32)


if __name__ == "__main__":
    key = jax.random.PRNGKey(0)
    k_i2h, k_h2h, k_h2o, k_idx = jax.random.split(key, 4)

    wi, bi = init_linear(k_i2h, n_letters, n_hidden)
    wh, bh = init_linear(k_h2h, n_hidden, n_hidden)
    wo, bo = init_linear(k_h2o, n_hidden, n_categories)

    def ref_forward(idx):
        # pure-JAX reference of the same forward pass (unfused, unpadded)
        h = jnp.zeros((idx.shape[1], n_hidden), jnp.float32)
        for t in range(idx.shape[0]):
            x_t = jax.nn.one_hot(idx[t], n_letters, dtype=jnp.float32)
            h = jnp.tanh(x_t @ wi + bi + h @ wh + bh)
        return jax.nn.log_softmax(h @ wo + bo, axis=1), h

    # --- batched run: B=8 sequences of length T=16 (deterministic) ---
    B, T = 8, 16
    idx = jax.random.randint(k_idx, (T, B), 0, n_letters, dtype=jnp.int32)

    output, hidden = rnn_forward(idx, wi, bi, wh, bh, wo, bo)
    output = jax.block_until_ready(output)
    hidden = jax.block_until_ready(hidden)

    out_ref, h_ref = ref_forward(idx)
    assert output.shape == (B, n_categories)
    assert hidden.shape == (B, n_hidden)
    assert jnp.allclose(output, out_ref, atol=1e-4)
    assert jnp.allclose(hidden, h_ref, atol=1e-4)

    # --- spec's original example: input = lineToTensor('Choi'), batch=1 ---
    idx_choi = line_to_indices("Choi")                     # [4, 1]
    out_c, h_c = rnn_forward(idx_choi, wi, bi, wh, bh, wo, bo)
    out_c = jax.block_until_ready(out_c)
    out_c_ref, h_c_ref = ref_forward(idx_choi)
    assert jnp.allclose(out_c, out_c_ref, atol=1e-4)
    assert jnp.allclose(h_c, h_c_ref, atol=1e-4)

    print("KERNEL_OK")
</pallas_src>

<mosaic_0001>
module attributes {stable_mosaic.version = 11 : i64} {
  func.func @rnn_seq_kernel(%arg0: memref<128x1xi32, #tpu.memory_space<vmem>>, %arg1: memref<128x128xf32, #tpu.memory_space<vmem>>, %arg2: memref<128x128xf32, #tpu.memory_space<vmem>>, %arg3: memref<1x128xf32, #tpu.memory_space<vmem>>, %arg4: memref<128x128xf32, #tpu.memory_space<vmem>>, %arg5: memref<1x128xf32, #tpu.memory_space<vmem>>, %arg6: memref<8x128xf32, #tpu.memory_space<vmem>>, %arg7: memref<8x128xf32, #tpu.memory_space<vmem>>) attributes {dimension_semantics = [], scalar_prefetch = 0 : i64, scratch_operands = 0 : i64, tpu.core_type = #tpu.core_type<tc>} {
    %c0 = arith.constant 0 : index
    %c0_0 = arith.constant 0 : index
    %0 = vector.load %arg0[%c0, %c0_0] : memref<128x1xi32, #tpu.memory_space<vmem>>, vector<128x1xi32>
    %1 = tpu.iota {dimensions = array<i32: 1>} : vector<128x128xi32>
    %2 = vector.broadcast %0 : vector<128x1xi32> to vector<128x128xi32>
    %3 = arith.cmpi eq, %1, %2 : vector<128x128xi32>
    %4 = arith.extui %3 : vector<128x128xi1> to vector<128x128xi32>
    %5 = arith.sitofp %4 : vector<128x128xi32> to vector<128x128xf32>
    %c0_1 = arith.constant 0 : index
    %c0_2 = arith.constant 0 : index
    %6 = vector.load %arg1[%c0_1, %c0_2] : memref<128x128xf32, #tpu.memory_space<vmem>>, vector<128x128xf32>
    %cst = arith.constant dense<0.000000e+00> : vector<128x128xf32>
    %7 = tpu.matmul %5, %6, %cst {dimension_numbers = #tpu.dot_dimension_numbers<[1], [0], [0], [1], [0, 0, 1, 1], [], []>} : vector<128x128xf32>, vector<128x128xf32>, vector<128x128xf32> -> vector<128x128xf32>
    %c0_3 = arith.constant 0 : index
    %c0_4 = arith.constant 0 : index
    %8 = vector.load %arg3[%c0_3, %c0_4] : memref<1x128xf32, #tpu.memory_space<vmem>>, vector<1x128xf32>
    %9 = vector.broadcast %8 : vector<1x128xf32> to vector<128x128xf32>
    %10 = arith.addf %7, %9 : vector<128x128xf32>
    %c0_5 = arith.constant 0 : index
    %c0_6 = arith.constant 0 : index
    %11 = vector.load %arg2[%c0_5, %c0_6] : memref<128x128xf32, #tpu.memory_space<vmem>>, vector<128x128xf32>
    %cst_7 = arith.constant 0.000000e+00 : f32
    %12 = vector.broadcast %cst_7 : f32 to vector<8x128xf32>
    %13 = vector.extract_strided_slice %10 {offsets = [0, 0], sizes = [8, 128], strides = [1, 1]} : vector<128x128xf32> to vector<8x128xf32>
    %cst_8 = arith.constant dense<0.000000e+00> : vector<8x128xf32>
    %14 = tpu.matmul %12, %11, %cst_8 {dimension_numbers = #tpu.dot_dimension_numbers<[1], [0], [0], [1], [0, 0, 1, 1], [], []>} : vector<8x128xf32>, vector<128x128xf32>, vector<8x128xf32> -> vector<8x128xf32>
    %15 = arith.addf %13, %14 : vector<8x128xf32>
    %16 = math.tanh %15 : vector<8x128xf32>
    %17 = vector.extract_strided_slice %10 {offsets = [8, 0], sizes = [8, 128], strides = [1, 1]} : vector<128x128xf32> to vector<8x128xf32>
    %cst_9 = arith.constant dense<0.000000e+00> : vector<8x128xf32>
    %18 = tpu.matmul %16, %11, %cst_9 {dimension_numbers = #tpu.dot_dimension_numbers<[1], [0], [0], [1], [0, 0, 1, 1], [], []>} : vector<8x128xf32>, vector<128x128xf32>, vector<8x128xf32> -> vector<8x128xf32>
    %19 = arith.addf %17, %18 : vector<8x128xf32>
    %20 = math.tanh %19 : vector<8x128xf32>
    %21 = vector.extract_strided_slice %10 {offsets = [16, 0], sizes = [8, 128], strides = [1, 1]} : vector<128x128xf32> to vector<8x128xf32>
    %cst_10 = arith.constant dense<0.000000e+00> : vector<8x128xf32>
    %22 = tpu.matmul %20, %11, %cst_10 {dimension_numbers = #tpu.dot_dimension_numbers<[1], [0], [0], [1], [0, 0, 1, 1], [], []>} : vector<8x128xf32>, vector<128x128xf32>, vector<8x128xf32> -> vector<8x128xf32>
    %23 = arith.addf %21, %22 : vector<8x128xf32>
    %24 = math.tanh %23 : vector<8x128xf32>
    %25 = vector.extract_strided_slice %10 {offsets = [24, 0], sizes = [8, 128], strides = [1, 1]} : vector<128x128xf32> to vector<8x128xf32>
    %cst_11 = arith.constant dense<0.000000e+00> : vector<8x128xf32>
    %26 = tpu.matmul %24, %11, %cst_11 {dimension_numbers = #tpu.dot_dimension_numbers<[1], [0], [0], [1], [0, 0, 1, 1], [], []>} : vector<8x128xf32>, vector<128x128xf32>, vector<8x128xf32> -> vector<8x128xf32>
    %27 = arith.addf %25, %26 : vector<8x128xf32>
    %28 = math.tanh %27 : vector<8x128xf32>
    %29 = vector.extract_strided_slice %10 {offsets = [32, 0], sizes = [8, 128], strides = [1, 1]} : vector<128x128xf32> to vector<8x128xf32>
    %cst_12 = arith.constant dense<0.000000e+00> : vector<8x128xf32>
    %30 = tpu.matmul %28, %11, %cst_12 {dimension_numbers = #tpu.dot_dimension_numbers<[1], [0], [0], [1], [0, 0, 1, 1], [], []>} : vector<8x128xf32>, vector<128x128xf32>, vector<8x128xf32> -> vector<8x128xf32>
    %31 = arith.addf %29, %30 : vector<8x128xf32>
    %32 = math.tanh %31 : vector<8x128xf32>
    %33 = vector.extract_strided_slice %10 {offsets = [40, 0], sizes = [8, 128], strides = [1, 1]} : vector<128x128xf32> to vector<8x128xf32>
    %cst_13 = arith.constant dense<0.000000e+00> : vector<8x128xf32>
    %34 = tpu.matmul %32, %11, %cst_13 {dimension_numbers = #tpu.dot_dimension_numbers<[1], [0], [0], [1], [0, 0, 1, 1], [], []>} : vector<8x128xf32>, vector<128x128xf32>, vector<8x128xf32> -> vector<8x128xf32>
    %35 = arith.addf %33, %34 : vector<8x128xf32>
    %36 = math.tanh %35 : vector<8x128xf32>
    %37 = vector.extract_strided_slice %10 {offsets = [48, 0], sizes = [8, 128], strides = [1, 1]} : vector<128x128xf32> to vector<8x128xf32>
    %cst_14 = arith.constant dense<0.000000e+00> : vector<8x128xf32>
    %38 = tpu.matmul %36, %11, %cst_14 {dimension_numbers = #tpu.dot_dimension_numbers<[1], [0], [0], [1], [0, 0, 1, 1], [], []>} : vector<8x128xf32>, vector<128x128xf32>, vector<8x128xf32> -> vector<8x128xf32>
    %39 = arith.addf %37, %38 : vector<8x128xf32>
    %40 = math.tanh %39 : vector<8x128xf32>
    %41 = vector.extract_strided_slice %10 {offsets = [56, 0], sizes = [8, 128], strides = [1, 1]} : vector<128x128xf32> to vector<8x128xf32>
    %cst_15 = arith.constant dense<0.000000e+00> : vector<8x128xf32>
    %42 = tpu.matmul %40, %11, %cst_15 {dimension_numbers = #tpu.dot_dimension_numbers<[1], [0], [0], [1], [0, 0, 1, 1], [], []>} : vector<8x128xf32>, vector<128x128xf32>, vector<8x128xf32> -> vector<8x128xf32>
    %43 = arith.addf %41, %42 : vector<8x128xf32>
    %44 = math.tanh %43 : vector<8x128xf32>
    %45 = vector.extract_strided_slice %10 {offsets = [64, 0], sizes = [8, 128], strides = [1, 1]} : vector<128x128xf32> to vector<8x128xf32>
    %cst_16 = arith.constant dense<0.000000e+00> : vector<8x128xf32>
    %46 = tpu.matmul %44, %11, %cst_16 {dimension_numbers = #tpu.dot_dimension_numbers<[1], [0], [0], [1], [0, 0, 1, 1], [], []>} : vector<8x128xf32>, vector<128x128xf32>, vector<8x128xf32> -> vector<8x128xf32>
    %47 = arith.addf %45, %46 : vector<8x128xf32>
    %48 = math.tanh %47 : vector<8x128xf32>
    %49 = vector.extract_strided_slice %10 {offsets = [72, 0], sizes = [8, 128], strides = [1, 1]} : vector<128x128xf32> to vector<8x128xf32>
    %cst_17 = arith.constant dense<0.000000e+00> : vector<8x128xf32>
    %50 = tpu.matmul %48, %11, %cst_17 {dimension_numbers = #tpu.dot_dimension_numbers<[1], [0], [0], [1], [0, 0, 1, 1], [], []>} : vector<8x128xf32>, vector<128x128xf32>, vector<8x128xf32> -> vector<8x128xf32>
    %51 = arith.addf %49, %50 : vector<8x128xf32>
    %52 = math.tanh %51 : vector<8x128xf32>
    %53 = vector.extract_strided_slice %10 {offsets = [80, 0], sizes = [8, 128], strides = [1, 1]} : vector<128x128xf32> to vector<8x128xf32>
    %cst_18 = arith.constant dense<0.000000e+00> : vector<8x128xf32>
    %54 = tpu.matmul %52, %11, %cst_18 {dimension_numbers = #tpu.dot_dimension_numbers<[1], [0], [0], [1], [0, 0, 1, 1], [], []>} : vector<8x128xf32>, vector<128x128xf32>, vector<8x128xf32> -> vector<8x128xf32>
    %55 = arith.addf %53, %54 : vector<8x128xf32>
    %56 = math.tanh %55 : vector<8x128xf32>
    %57 = vector.extract_strided_slice %10 {offsets = [88, 0], sizes = [8, 128], strides = [1, 1]} : vector<128x128xf32> to vector<8x128xf32>
    %cst_19 = arith.constant dense<0.000000e+00> : vector<8x128xf32>
    %58 = tpu.matmul %56, %11, %cst_19 {dimension_numbers = #tpu.dot_dimension_numbers<[1], [0], [0], [1], [0, 0, 1, 1], [], []>} : vector<8x128xf32>, vector<128x128xf32>, vector<8x128xf32> -> vector<8x128xf32>
    %59 = arith.addf %57, %58 : vector<8x128xf32>
    %60 = math.tanh %59 : vector<8x128xf32>
    %61 = vector.extract_strided_slice %10 {offsets = [96, 0], sizes = [8, 128], strides = [1, 1]} : vector<128x128xf32> to vector<8x128xf32>
    %cst_20 = arith.constant dense<0.000000e+00> : vector<8x128xf32>
    %62 = tpu.matmul %60, %11, %cst_20 {dimension_numbers = #tpu.dot_dimension_numbers<[1], [0], [0], [1], [0, 0, 1, 1], [], []>} : vector<8x128xf32>, vector<128x128xf32>, vector<8x128xf32> -> vector<8x128xf32>
    %63 = arith.addf %61, %62 : vector<8x128xf32>
    %64 = math.tanh %63 : vector<8x128xf32>
    %65 = vector.extract_strided_slice %10 {offsets = [104, 0], sizes = [8, 128], strides = [1, 1]} : vector<128x128xf32> to vector<8x128xf32>
    %cst_21 = arith.constant dense<0.000000e+00> : vector<8x128xf32>
    %66 = tpu.matmul %64, %11, %cst_21 {dimension_numbers = #tpu.dot_dimension_numbers<[1], [0], [0], [1], [0, 0, 1, 1], [], []>} : vector<8x128xf32>, vector<128x128xf32>, vector<8x128xf32> -> vector<8x128xf32>
    %67 = arith.addf %65, %66 : vector<8x128xf32>
    %68 = math.tanh %67 : vector<8x128xf32>
    %69 = vector.extract_strided_slice %10 {offsets = [112, 0], sizes = [8, 128], strides = [1, 1]} : vector<128x128xf32> to vector<8x128xf32>
    %cst_22 = arith.constant dense<0.000000e+00> : vector<8x128xf32>
    %70 = tpu.matmul %68, %11, %cst_22 {dimension_numbers = #tpu.dot_dimension_numbers<[1], [0], [0], [1], [0, 0, 1, 1], [], []>} : vector<8x128xf32>, vector<128x128xf32>, vector<8x128xf32> -> vector<8x128xf32>
    %71 = arith.addf %69, %70 : vector<8x128xf32>
    %72 = math.tanh %71 : vector<8x128xf32>
    %73 = vector.extract_strided_slice %10 {offsets = [120, 0], sizes = [8, 128], strides = [1, 1]} : vector<128x128xf32> to vector<8x128xf32>
    %cst_23 = arith.constant dense<0.000000e+00> : vector<8x128xf32>
    %74 = tpu.matmul %72, %11, %cst_23 {dimension_numbers = #tpu.dot_dimension_numbers<[1], [0], [0], [1], [0, 0, 1, 1], [], []>} : vector<8x128xf32>, vector<128x128xf32>, vector<8x128xf32> -> vector<8x128xf32>
    %75 = arith.addf %73, %74 : vector<8x128xf32>
    %76 = math.tanh %75 : vector<8x128xf32>
    %c0_24 = arith.constant 0 : index
    %c0_25 = arith.constant 0 : index
    %77 = vector.load %arg4[%c0_24, %c0_25] : memref<128x128xf32, #tpu.memory_space<vmem>>, vector<128x128xf32>
    %cst_26 = arith.constant dense<0.000000e+00> : vector<8x128xf32>
    %78 = tpu.matmul %76, %77, %cst_26 {dimension_numbers = #tpu.dot_dimension_numbers<[1], [0], [0], [1], [0, 0, 1, 1], [], []>} : vector<8x128xf32>, vector<128x128xf32>, vector<8x128xf32> -> vector<8x128xf32>
    %c0_27 = arith.constant 0 : index
    %c0_28 = arith.constant 0 : index
    %79 = vector.load %arg5[%c0_27, %c0_28] : memref<1x128xf32, #tpu.memory_space<vmem>>, vector<1x128xf32>
    %80 = vector.broadcast %79 : vector<1x128xf32> to vector<8x128xf32>
    %81 = arith.addf %78, %80 : vector<8x128xf32>
    %cst_29 = arith.constant dense<0xFF800000> : vector<8xf32>
    %82 = vector.multi_reduction <maximumf>, %81, %cst_29 [1] : vector<8x128xf32> to vector<8xf32>
    %83 = vector.shape_cast %82 : vector<8xf32> to vector<8x1xf32>
    %84 = vector.broadcast %83 : vector<8x1xf32> to vector<8x128xf32>
    %85 = arith.subf %81, %84 : vector<8x128xf32>
    %86 = math.exp %85 : vector<8x128xf32>
    %cst_30 = arith.constant dense<0.000000e+00> : vector<8xf32>
    %87 = vector.multi_reduction <add>, %86, %cst_30 [1] : vector<8x128xf32> to vector<8xf32>
    %88 = vector.shape_cast %87 : vector<8xf32> to vector<8x1xf32>
    %89 = math.log %88 : vector<8x1xf32>
    %90 = arith.addf %83, %89 : vector<8x1xf32>
    %91 = vector.broadcast %90 : vector<8x1xf32> to vector<8x128xf32>
    %92 = arith.subf %81, %91 : vector<8x128xf32>
    %c0_31 = arith.constant 0 : index
    %c0_32 = arith.constant 0 : index
    %93 = vector.load %arg6[%c0_31, %c0_32] : memref<8x128xf32, #tpu.memory_space<vmem>>, vector<8x128xf32>
    tpu.vector_store %arg6[%c0_31, %c0_32], %92 {strides = array<i32>} : memref<8x128xf32, #tpu.memory_space<vmem>>, vector<8x128xf32>,
    %c0_33 = arith.constant 0 : index
    %c0_34 = arith.constant 0 : index
    %94 = vector.load %arg7[%c0_33, %c0_34] : memref<8x128xf32, #tpu.memory_space<vmem>>, vector<8x128xf32>
    tpu.vector_store %arg7[%c0_33, %c0_34], %76 {strides = array<i32>} : memref<8x128xf32, #tpu.memory_space<vmem>>, vector<8x128xf32>,
    return
  }
}

</mosaic_0001>

<bundles_post_ra>
// kernel: _rnn_forward.1
= control target key start
LH: loop header
LB: loop body
LE: loop exit
PB: predicated region body
PF: predicated region fallthrough
CT: control target
= control target key end

     0   :  { %13 = vsyncpa [#allocation3], 0  ;;  %v809_v2 = vmov 0   ;;  %s1398_s0 = inlined_call_operand.vmem [shape: s32[128,1], index: 0, kind: input, shape index: {}]   ;;  %s1399_s1 = inlined_call_operand.vmem [shape: f32[128,128], index: 1, kind: input, shape index: {}]   ;;  %s1400_s2 = inlined_call_operand.vmem [shape: f32[128,128], index: 2, kind: input, shape index: {}]   ;;  %s1401_s3 = inlined_call_operand.vmem [shape: f32[1,128], index: 3, kind: input, shape index: {}]   ;;  %s1402_s4 = inlined_call_operand.vmem [shape: f32[128,128], index: 4, kind: input, shape index: {}]   ;;  %s1403_s5 = inlined_call_operand.vmem [shape: f32[1,128], index: 5, kind: input, shape index: {}]   ;;  %s1404_s6 = inlined_call_operand.hbm [shape: f32[8,128], index: 6, kind: output, shape index: {0}]   ;;  %s1405_s7 = inlined_call_operand.hbm [shape: f32[8,128], index: 7, kind: output, shape index: {1}]  }
   0x1   :  { %v27_v0 = vld [vmem:[%s1398_s0] sm:$0xff]  ;;  %v29_v1 = vld [vmem:[%s1398_s0 + $0x10] sm:$0xff]  ;;  %716 = vset.pattern.permute.xlu0 %v809_v2  ;;  %717 = vset.pattern.permute.xlu1 %v809_v2 }
   0x2   :  { %46 = vperm.xlu0 %716, %v27_v0   ;;  %52 = vperm.xlu1 %717, %v29_v1  }
   0x3   :  { %718 = vset.pattern.permute.xlu2 %v809_v2 }
   0x4   :  { %14 = vsyncpa [#allocation5], 0  ;;  %v28_v3 = vld [vmem:[%s1398_s0 + $0x8] sm:$0xff]  ;;  %v30_v4 = vld [vmem:[%s1398_s0 + $0x18] sm:$0xff]  ;;  %v810_v48 = vmov 0.0   ;;  %v43_v50 = vlaneseq  ;;  %v811_v53 = vmov 1.0  }
   0x5   :  { %v31_v5 = vld [vmem:[%s1398_s0 + $0x20] sm:$0xff]  ;;  %v156_v6 = vld [vmem:[%s1399_s1 + $0x78] sm:$0xff]  ;;  %v155_v7 = vld [vmem:[%s1399_s1 + $0x70] sm:$0xff]  ;;  %s665_s13 = sshll.u32 %s1405_s7, 4  ;;  %s654_s17 = sshll.u32 %s1404_s6, 4  ;;  %s666_s13 = int_to_ptr.hbm [resolvable:$true] %s665_s13  ;;  %s655_s17 = int_to_ptr.hbm [resolvable:$true] %s654_s17 }
   0x6   :  { %58 = vperm.xlu2 %718, %v31_v5   ;;  %161 = vmatpush.msra.mxu0 %v156_v6  ;;  %v878_v8 = vld [vmem:[%s1400_s2 + $0x78] sm:$0xff]  ;;  %v154_v9 = vld [vmem:[%s1399_s1 + $0x68] sm:$0xff]  ;;  %v887_v10 = vld [vmem:[%s1400_s2 + $0x70] sm:$0xff]  ;;  %v1125_v51 = vand.u32 127, %v43_v50 }
   0x7   :  { %242 = vmatpush.msra.mxu1 %v878_v8  ;;  %264 = vmatpush.msra.mxu2 %v878_v8  ;;  %v893_v11 = vld [vmem:[%s1400_s2 + $0x68] sm:$0xff]  ;;  %v33_v12 = vld [vmem:[%s1398_s0 + $0x30] sm:$0xff]  ;;  %v34_v13 = vld [vmem:[%s1398_s0 + $0x38] sm:$0xff] }
   0x8   :  { %162 = vmatpush.msra.mxu0 %v155_v7  ;;  %286 = vmatpush.msra.mxu3 %v878_v8  ;;  %v32_v14 = vld [vmem:[%s1398_s0 + $0x28] sm:$0xff]  ;;  %v153_v15 = vld [vmem:[%s1399_s1 + $0x60] sm:$0xff]  ;;  %v152_v17 = vld [vmem:[%s1399_s1 + $0x58] sm:$0xff] }
   0x9   :  { %243 = vmatpush.msra.mxu1 %v887_v10  ;;  %265 = vmatpush.msra.mxu2 %v887_v10  ;;  %v915_v16 = vld [vmem:[%s1400_s2 + $0x60] sm:$0xff]  ;;  %v924_v18 = vld [vmem:[%s1400_s2 + $0x58] sm:$0xff]  ;;  %v151_v19 = vld [vmem:[%s1399_s1 + $0x50] sm:$0xff] }
   0xa   :  { %49 = vperm.xlu0 %716, %v28_v3   ;;  %55 = vperm.xlu1 %717, %v30_v4   ;;  %v934_v20 = vld [vmem:[%s1400_s2 + $0x50] sm:$0xff]  ;;  %v150_v21 = vld [vmem:[%s1399_s1 + $0x48] sm:$0xff]  ;;  %v35_v24 = vld [vmem:[%s1398_s0 + $0x40] sm:$0xff] }
   0xb   :  { %163 = vmatpush.msra.mxu0 %v154_v9  ;;  %287 = vmatpush.msra.mxu3 %v887_v10  ;;  %v36_v22 = vld [vmem:[%s1398_s0 + $0x48] sm:$0xff]  ;;  %v37_v23 = vld [vmem:[%s1398_s0 + $0x50] sm:$0xff]  ;;  %v149_v25 = vld [vmem:[%s1399_s1 + $0x40] sm:$0xff] }
   0xc   :  { %244 = vmatpush.msra.mxu1 %v893_v11  ;;  %266 = vmatpush.msra.mxu2 %v893_v11  ;;  %v960_v26 = vld [vmem:[%s1400_s2 + $0x48] sm:$0xff]  ;;  %v148_v27 = vld [vmem:[%s1399_s1 + $0x38] sm:$0xff]  ;;  %v969_v28 = vld [vmem:[%s1400_s2 + $0x40] sm:$0xff] }
   0xd   :  { %164 = vmatpush.msra.mxu0 %v153_v15  ;;  %288 = vmatpush.msra.mxu3 %v893_v11  ;;  %v147_v29 = vld [vmem:[%s1399_s1 + $0x30] sm:$0xff]  ;;  %v979_v30 = vld [vmem:[%s1400_s2 + $0x38] sm:$0xff]  ;;  %v146_v31 = vld [vmem:[%s1399_s1 + $0x28] sm:$0xff] }
   0xe   :  { %61 = vperm.xlu2 %718, %v32_v14   ;;  %245 = vmatpush.msra.mxu1 %v915_v16  ;;  %v39_v32 = vld [vmem:[%s1398_s0 + $0x60] sm:$0xff]  ;;  %v40_v33 = vld [vmem:[%s1398_s0 + $0x68] sm:$0xff]  ;;  %v998_v34 = vld [vmem:[%s1400_s2 + $0x30] sm:$0xff] }
   0xf   :  { %267 = vmatpush.msra.mxu2 %v915_v16  ;;  %165 = vmatpush.msra.mxu0 %v152_v17  ;;  %v145_v35 = vld [vmem:[%s1399_s1 + $0x20] sm:$0xff]  ;;  %v38_v36 = vld [vmem:[%s1398_s0 + $0x58] sm:$0xff]  ;;  %v1011_v37 = vld [vmem:[%s1400_s2 + $0x28] sm:$0xff] }
  0x10   :  { %246 = vmatpush.msra.mxu1 %v924_v18  ;;  %289 = vmatpush.msra.mxu3 %v915_v16  ;;  %v144_v38 = vld [vmem:[%s1399_s1 + $0x18] sm:$0xff]  ;;  %v1020_v39 = vld [vmem:[%s1400_s2 + $0x20] sm:$0xff]  ;;  %v143_v40 = vld [vmem:[%s1399_s1 + $0x10] sm:$0xff] }
  0x11   :  { %268 = vmatpush.msra.mxu2 %v924_v18  ;;  %166 = vmatpush.msra.mxu0 %v151_v19  ;;  %v1030_v41 = vld [vmem:[%s1400_s2 + $0x18] sm:$0xff]  ;;  %v142_v42 = vld [vmem:[%s1399_s1 + $0x8] sm:$0xff]  ;;  %v1044_v44 = vld [vmem:[%s1400_s2 + $0x10] sm:$0xff] }
  0x12   :  { %64 = vperm.xlu0 %716, %v33_v12   ;;  %67 = vperm.xlu1 %717, %v34_v13   ;;  %v42_v43 = vld [vmem:[%s1398_s0 + $0x78] sm:$0xff]  ;;  %v141_v45 = vld [vmem:[%s1399_s1] sm:$0xff]  ;;  %v1062_v46 = vld [vmem:[%s1400_s2 + $0x8] sm:$0xff] }
  0x13   :  { %247 = vmatpush.msra.mxu1 %v934_v20  ;;  %269 = vmatpush.msra.mxu2 %v934_v20  ;;  %v1068_v47 = vld [vmem:[%s1400_s2] sm:$0xff]  ;;  %v41_v49 = vld [vmem:[%s1398_s0 + $0x70] sm:$0xff] }
  0x14   :  { %167 = vmatpush.msra.mxu0 %v150_v21  ;;  %290 = vmatpush.msra.mxu3 %v924_v18  ;;  %v1195_v5 = vld [vmem:[%s1401_s3] ss:$0 sm:$0xff] }
  0x15   :  { %248 = vmatpush.msra.mxu1 %v960_v26  ;;  %270 = vmatpush.msra.mxu2 %v960_v26 }
  0x16   :  { %70 = vperm.xlu2 %718, %v35_v24   ;;  %168 = vmatpush.msra.mxu0 %v149_v25 }
  0x17   :  { %291 = vmatpush.msra.mxu3 %v934_v20  ;;  %249 = vmatpush.msra.mxu1 %v969_v28 }
  0x18   :  { %169 = vmatpush.msra.mxu0 %v148_v27  ;;  %271 = vmatpush.msra.mxu2 %v969_v28 }
  0x19   :  { %292 = vmatpush.msra.mxu3 %v960_v26  ;;  %250 = vmatpush.msra.mxu1 %v979_v30 }
  0x1a   :  { %73 = vperm.xlu0 %716, %v36_v22   ;;  %76 = vperm.xlu1 %717, %v37_v23  }
  0x1b   :  { %170 = vmatpush.msra.mxu0 %v147_v29  ;;  %272 = vmatpush.msra.mxu2 %v979_v30 }
  0x1c   :  { %293 = vmatpush.msra.mxu3 %v969_v28  ;;  %251 = vmatpush.msra.mxu1 %v998_v34 }
  0x1d   :  { %171 = vmatpush.msra.mxu0 %v146_v31  ;;  %273 = vmatpush.msra.mxu2 %v998_v34 }
  0x1e   :  { %79 = vperm.xlu2 %718, %v38_v36   ;;  %252 = vmatpush.msra.mxu1 %v1011_v37 }
  0x1f   :  { %172 = vmatpush.msra.mxu0 %v145_v35  ;;  %274 = vmatpush.msra.mxu2 %v1011_v37 }
  0x20   :  { %294 = vmatpush.msra.mxu3 %v979_v30  ;;  %253 = vmatpush.msra.mxu1 %v1020_v39 }
  0x21   :  { %173 = vmatpush.msra.mxu0 %v144_v38  ;;  %275 = vmatpush.msra.mxu2 %v1020_v39 }
  0x22   :  { %82 = vperm.xlu0 %716, %v39_v32   ;;  %85 = vperm.xlu1 %717, %v40_v33  }
  0x23   :  { %174 = vmatpush.msra.mxu0 %v143_v40  ;;  %295 = vmatpush.msra.mxu3 %v998_v34 }
  0x24   :  { %254 = vmatpush.msra.mxu1 %v1030_v41  ;;  %276 = vmatpush.msra.mxu2 %v1030_v41 }
  0x25   :  { %175 = vmatpush.msra.mxu0 %v142_v42  ;;  %296 = vmatpush.msra.mxu3 %v1011_v37 }
  0x26   :  { %255 = vmatpush.msra.mxu1 %v1044_v44  ;;  %277 = vmatpush.msra.mxu2 %v1044_v44 }
  0x27   :  { %297 = vmatpush.msra.mxu3 %v1020_v39  ;;  %176 = vmatpush.msra.mxu0 %v141_v45 }
  0x28   :  { %256 = vmatpush.msra.mxu1 %v1062_v46  ;;  %278 = vmatpush.msra.mxu2 %v1062_v46 }
  0x29   :  { %298 = vmatpush.msra.mxu3 %v1030_v41  ;;  %506 = vmatpush.msrb.mxu0 %v878_v8 }
  0x2a   :  { %91 = vperm.xlu0 %716, %v42_v43   ;;  %257 = vmatpush.msra.mxu1 %v1068_v47 }
  0x2b   :  { %299 = vmatpush.msra.mxu3 %v1044_v44  ;;  %258 = vmatmul.f32.vlgmr.msra.gmra.mxu1 %v810_v48 }
  0x2c   :  { %279 = vmatpush.msra.mxu2 %v1068_v47  ;;  %308 = vmatpush.msrb.mxu1 %v878_v8 }
  0x2d   :  { %300 = vmatpush.msra.mxu3 %v1062_v46  ;;  %507 = vmatpush.msrb.mxu0 %v887_v10 }
  0x2e   :  { %330 = vmatpush.msrb.mxu2 %v878_v8  ;;  %309 = vmatpush.msrb.mxu1 %v887_v10 }
  0x2f   :  { %301 = vmatpush.msra.mxu3 %v1068_v47  ;;  %508 = vmatpush.msrb.mxu0 %v893_v11 }
  0x30   :  { %331 = vmatpush.msrb.mxu2 %v887_v10  ;;  %310 = vmatpush.msrb.mxu1 %v893_v11 }
  0x31   :  { %352 = vmatpush.msrb.mxu3 %v878_v8  ;;  %509 = vmatpush.msrb.mxu0 %v915_v16 }
  0x32   :  { %332 = vmatpush.msrb.mxu2 %v893_v11  ;;  %311 = vmatpush.msrb.mxu1 %v915_v16 }
  0x33   :  { %353 = vmatpush.msrb.mxu3 %v887_v10  ;;  %510 = vmatpush.msrb.mxu0 %v924_v18 }
  0x34   :  { %333 = vmatpush.msrb.mxu2 %v915_v16  ;;  %312 = vmatpush.msrb.mxu1 %v924_v18 }
  0x35   :  { %354 = vmatpush.msrb.mxu3 %v893_v11  ;;  %511 = vmatpush.msrb.mxu0 %v934_v20 }
  0x36   :  { %334 = vmatpush.msrb.mxu2 %v924_v18  ;;  %313 = vmatpush.msrb.mxu1 %v934_v20 }
  0x37   :  { %355 = vmatpush.msrb.mxu3 %v915_v16  ;;  %512 = vmatpush.msrb.mxu0 %v960_v26 }
  0x38   :  { %335 = vmatpush.msrb.mxu2 %v934_v20  ;;  %314 = vmatpush.msrb.mxu1 %v960_v26 }
  0x39   :  { %356 = vmatpush.msrb.mxu3 %v924_v18  ;;  %88 = vperm.xlu2 %718, %v41_v49  }
  0x3a   :  { %336 = vmatpush.msrb.mxu2 %v960_v26  ;;  %315 = vmatpush.msrb.mxu1 %v969_v28 }
  0x3b   :  { %357 = vmatpush.msrb.mxu3 %v934_v20  ;;  %513 = vmatpush.msrb.mxu0 %v969_v28 }
  0x3c   :  { %337 = vmatpush.msrb.mxu2 %v969_v28  ;;  %316 = vmatpush.msrb.mxu1 %v979_v30 }
  0x3d   :  { %358 = vmatpush.msrb.mxu3 %v960_v26  ;;  %514 = vmatpush.msrb.mxu0 %v979_v30 }
  0x3e   :  { %338 = vmatpush.msrb.mxu2 %v979_v30  ;;  %317 = vmatpush.msrb.mxu1 %v998_v34 }
  0x3f   :  { %359 = vmatpush.msrb.mxu3 %v969_v28  ;;  %515 = vmatpush.msrb.mxu0 %v998_v34 }
  0x40   :  { %339 = vmatpush.msrb.mxu2 %v998_v34  ;;  %318 = vmatpush.msrb.mxu1 %v1011_v37 }
  0x41   :  { %360 = vmatpush.msrb.mxu3 %v979_v30  ;;  %516 = vmatpush.msrb.mxu0 %v1011_v37 }
  0x42   :  { %340 = vmatpush.msrb.mxu2 %v1011_v37  ;;  %319 = vmatpush.msrb.mxu1 %v1020_v39 }
  0x43   :  { %361 = vmatpush.msrb.mxu3 %v998_v34  ;;  %517 = vmatpush.msrb.mxu0 %v1020_v39 }
  0x44   :  { %341 = vmatpush.msrb.mxu2 %v1020_v39  ;;  %320 = vmatpush.msrb.mxu1 %v1030_v41 }
  0x45   :  { %362 = vmatpush.msrb.mxu3 %v1011_v37  ;;  %518 = vmatpush.msrb.mxu0 %v1030_v41 }
  0x46   :  { %342 = vmatpush.msrb.mxu2 %v1030_v41  ;;  %321 = vmatpush.msrb.mxu1 %v1044_v44 }
  0x47   :  { %363 = vmatpush.msrb.mxu3 %v1020_v39  ;;  %519 = vmatpush.msrb.mxu0 %v1044_v44 }
  0x48   :  { %343 = vmatpush.msrb.mxu2 %v1044_v44  ;;  %322 = vmatpush.msrb.mxu1 %v1062_v46 }
  0x49   :  { %364 = vmatpush.msrb.mxu3 %v1030_v41  ;;  %520 = vmatpush.msrb.mxu0 %v1062_v46 }
  0x4a   :  { %344 = vmatpush.msrb.mxu2 %v1062_v46  ;;  %323 = vmatpush.msrb.mxu1 %v1068_v47 }
  0x4b   :  { %365 = vmatpush.msrb.mxu3 %v1044_v44  ;;  %521 = vmatpush.msrb.mxu0 %v1068_v47 }
  0x4c   :  { %345 = vmatpush.msrb.mxu2 %v1068_v47  ;;  %374 = vmatpush.msra.mxu1 %v878_v8 }
  0x4d   :  { %366 = vmatpush.msrb.mxu3 %v1062_v46 }
  0x4e   :  { %375 = vmatpush.msra.mxu1 %v887_v10 }
  0x4f   :  { %367 = vmatpush.msrb.mxu3 %v1068_v47 }
  0x50   :  { %376 = vmatpush.msra.mxu1 %v893_v11 }
  0x52   :  { %377 = vmatpush.msra.mxu1 %v915_v16 }
  0x54   :  { %378 = vmatpush.msra.mxu1 %v924_v18 }
  0x56   :  { %379 = vmatpush.msra.mxu1 %v934_v20 }
  0x58   :  { %380 = vmatpush.msra.mxu1 %v960_v26 }
  0x5a   :  { %381 = vmatpush.msra.mxu1 %v969_v28 }
  0x5c   :  { %382 = vmatpush.msra.mxu1 %v979_v30 }
  0x5e   :  { %383 = vmatpush.msra.mxu1 %v998_v34 }
  0x60   :  { %384 = vmatpush.msra.mxu1 %v1011_v37  ;;  %v59_v57 = vpop.permute.xlu2 %58 }
  0x61   :  { %vm97_vm4 = vcmp.eq.s32.totalorder %v1125_v51, %v59_v57 }
  0x62   :  { %385 = vmatpush.msra.mxu1 %v1020_v39 }
  0x64   :  { %386 = vmatpush.msra.mxu1 %v1030_v41 }
  0x66   :  { %387 = vmatpush.msra.mxu1 %v1044_v44 }
  0x68   :  { %388 = vmatpush.msra.mxu1 %v1062_v46  ;;  %v62_v58 = vpop.permute.xlu2 %61 }
  0x69   :  { %vm98_vm5 = vcmp.eq.s32.totalorder %v1125_v51, %v62_v58 }
  0x6a   :  { %389 = vmatpush.msra.mxu1 %v1068_v47 }
  0x70   :  { %v71_v61 = vpop.permute.xlu2 %70 }
  0x71   :  { %vm101_vm8 = vcmp.eq.s32.totalorder %v1125_v51, %v71_v61 }
  0x74   :  { %v47_v52 = vpop.permute.xlu0 %46  ;;  %v53_v55 = vpop.permute.xlu1 %52 }
  0x75   :  { %vm93_vm0 = vcmp.eq.s32.totalorder %v1125_v51, %v47_v52  ;;  %vm95_vm2 = vcmp.eq.s32.totalorder %v1125_v51, %v53_v55 }
  0x76   :  { %695 = vmatmul.msk.f32.vlgmr.msra.gmra.mxu0 %vm93_vm0, %v811_v53 }
  0x78   :  { %v80_v0 = vpop.permute.xlu2 %79 }
  0x79   :  { %vm104_vm11 = vcmp.eq.s32.totalorder %v1125_v51, %v80_v0 }
  0x7c   :  { %v50_v54 = vpop.permute.xlu0 %49  ;;  %v56_v56 = vpop.permute.xlu1 %55 }
  0x7d   :  { %vm94_vm1 = vcmp.eq.s32.totalorder %v1125_v51, %v50_v54  ;;  %vm96_vm3 = vcmp.eq.s32.totalorder %v1125_v51, %v56_v56 }
  0x7e   :  { %696 = vmatmul.msk.f32.gmra.mxu0 %vm94_vm1, %v811_v53 }
  0x84   :  { %v65_v59 = vpop.permute.xlu0 %64  ;;  %v68_v60 = vpop.permute.xlu1 %67 }
  0x85   :  { %vm99_vm6 = vcmp.eq.s32.totalorder %v1125_v51, %v65_v59  ;;  %vm100_vm7 = vcmp.eq.s32.totalorder %v1125_v51, %v68_v60 }
  0x86   :  { %697 = vmatmul.msk.f32.gmra.mxu0 %vm95_vm2, %v811_v53 }
  0x8c   :  { %v74_v62 = vpop.permute.xlu0 %73  ;;  %v77_v63 = vpop.permute.xlu1 %76 }
  0x8d   :  { %vm102_vm9 = vcmp.eq.s32.totalorder %v1125_v51, %v74_v62  ;;  %vm103_vm10 = vcmp.eq.s32.totalorder %v1125_v51, %v77_v63 }
  0x8e   :  { %698 = vmatmul.msk.f32.gmra.mxu0 %vm96_vm3, %v811_v53 }
  0x93   :  { %v89_v3 = vpop.permute.xlu2 %88 }
  0x94   :  { %v83_v1 = vpop.permute.xlu0 %82  ;;  %v86_v2 = vpop.permute.xlu1 %85  ;;  %vm107_vm14 = vcmp.eq.s32.totalorder %v1125_v51, %v89_v3 }
  0x95   :  { %vm105_vm12 = vcmp.eq.s32.totalorder %v1125_v51, %v83_v1  ;;  %vm106_vm13 = vcmp.eq.s32.totalorder %v1125_v51, %v86_v2 }
  0x96   :  { %699 = vmatmul.msk.f32.gmra.mxu0 %vm97_vm4, %v811_v53 }
  0x9c   :  { %v92_v4 = vpop.permute.xlu0 %91 }
  0x9d   :  { %vm108_vm15 = vcmp.eq.s32.totalorder %v1125_v51, %v92_v4 }
  0x9e   :  { %700 = vmatmul.msk.f32.gmra.mxu0 %vm98_vm5, %v811_v53 }
  0xa6   :  { %701 = vmatmul.msk.f32.gmra.mxu0 %vm99_vm6, %v811_v53 }
  0xa8   :  { %v259_v7 = vpop.f32.mrf.mxu1 }
  0xae   :  { %702 = vmatmul.msk.f32.gmra.mxu0 %vm100_vm7, %v811_v53 }
  0xb6   :  { %703 = vmatmul.msk.f32.gmra.mxu0 %vm101_vm8, %v811_v53 }
  0xbe   :  { %704 = vmatmul.msk.f32.gmra.mxu0 %vm102_vm9, %v811_v53 }
  0xc6   :  { %705 = vmatmul.msk.f32.gmra.mxu0 %vm103_vm10, %v811_v53 }
  0xce   :  { %706 = vmatmul.msk.f32.gmra.mxu0 %vm104_vm11, %v811_v53 }
  0xd6   :  { %707 = vmatmul.msk.f32.gmra.mxu0 %vm105_vm12, %v811_v53 }
  0xde   :  { %708 = vmatmul.msk.f32.gmra.mxu0 %vm106_vm13, %v811_v53 }
  0xe6   :  { %709 = vmatmul.msk.f32.gmra.mxu0 %vm107_vm14, %v811_v53 }
  0xee   :  { %710 = vmatmul.msk.f32.gmra.mxu0 %vm108_vm15, %v811_v53 }
  0xf3   :  { %v178_v6 = vpop.f32.mrf.mxu0 }
  0xf4   :  { %v179_v9 = vadd.f32 %v1195_v5, %v178_v6 }
  0xf6   :  { %v262_v12 = vadd.f32 %v259_v7, %v179_v9 }
  0xf8   :  { %721 = vtanh.f32 %v262_v12 }
  0xfb   :  { %v181_v14 = vpop.f32.mrf.mxu0 }
  0xfc   :  { %v182_v15 = vadd.f32 %v1195_v5, %v181_v14 }
  0xfe   :  { %v722_v13 = vpop.eup %721 }
  0xff   :  { %280 = vmatmul.f32.vlgmr.msra.gmra.mxu2 %v722_v13 }
 0x100   :  { %396 = vmatpush.msra.mxu2 %v878_v8 }
 0x102   :  { %397 = vmatpush.msra.mxu2 %v887_v10 }
 0x103   :  { %v184_v22 = vpop.f32.mrf.mxu0 }
 0x104   :  { %398 = vmatpush.msra.mxu2 %v893_v11  ;;  %v185_v23 = vadd.f32 %v1195_v5, %v184_v22  ;;  %v608_v22 = vld [vmem:[%s1402_s4 + $0x70] sm:$0xff] }
 0x106   :  { %399 = vmatpush.msra.mxu2 %v915_v16 }
 0x108   :  { %400 = vmatpush.msra.mxu2 %v924_v18 }
 0x10a   :  { %401 = vmatpush.msra.mxu2 %v934_v20 }
 0x10b   :  { %v187_v29 = vpop.f32.mrf.mxu0 }
 0x10c   :  { %402 = vmatpush.msra.mxu2 %v960_v26  ;;  %v188_v31 = vadd.f32 %v1195_v5, %v187_v29  ;;  %v603_v29 = vld [vmem:[%s1402_s4 + $0x48] sm:$0xff] }
 0x10e   :  { %403 = vmatpush.msra.mxu2 %v969_v28 }
 0x110   :  { %404 = vmatpush.msra.mxu2 %v979_v30 }
 0x112   :  { %405 = vmatpush.msra.mxu2 %v998_v34 }
 0x113   :  { %v190_v36 = vpop.f32.mrf.mxu0 }
 0x114   :  { %406 = vmatpush.msra.mxu2 %v1011_v37  ;;  %v191_v38 = vadd.f32 %v1195_v5, %v190_v36 }
 0x116   :  { %407 = vmatpush.msra.mxu2 %v1020_v39 }
 0x118   :  { %408 = vmatpush.msra.mxu2 %v1030_v41 }
 0x11a   :  { %409 = vmatpush.msra.mxu2 %v1044_v44 }
 0x11b   :  { %v193_v45 = vpop.f32.mrf.mxu0 }
 0x11c   :  { %410 = vmatpush.msra.mxu2 %v1062_v46  ;;  %v194_v48 = vadd.f32 %v1195_v5, %v193_v45  ;;  %v597_v45 = vld [vmem:[%s1402_s4 + $0x18] sm:$0xff] }
 0x11e   :  { %411 = vmatpush.msra.mxu2 %v1068_v47 }
 0x123   :  { %v196_v52 = vpop.f32.mrf.mxu0 }
 0x124   :  { %v197_v53 = vadd.f32 %v1195_v5, %v196_v52 }
 0x12b   :  { %v199_v57 = vpop.f32.mrf.mxu0 }
 0x12c   :  { %v200_v58 = vadd.f32 %v1195_v5, %v199_v57 }
 0x182   :  { %v281_v17 = vpop.f32.mrf.mxu2 }
 0x183   :  { %v284_v19 = vadd.f32 %v281_v17, %v182_v15 }
 0x185   :  { %723 = vtanh.f32 %v284_v19 }
 0x18b   :  { %v724_v21 = vpop.eup %723 }
 0x18c   :  { %302 = vmatmul.f32.vlgmr.msra.gmra.mxu3 %v724_v21  ;;  %v609_v21 = vld [vmem:[%s1402_s4 + $0x78] sm:$0xff] }
 0x18d   :  { %418 = vmatpush.msra.mxu3 %v878_v8  ;;  %614 = vmatpush.msra.mxu0 %v609_v21 }
 0x18f   :  { %419 = vmatpush.msra.mxu3 %v887_v10  ;;  %615 = vmatpush.msra.mxu0 %v608_v22 }
 0x191   :  { %420 = vmatpush.msra.mxu3 %v893_v11 }
 0x193   :  { %421 = vmatpush.msra.mxu3 %v915_v16 }
 0x195   :  { %422 = vmatpush.msra.mxu3 %v924_v18 }
 0x197   :  { %423 = vmatpush.msra.mxu3 %v934_v20 }
 0x199   :  { %424 = vmatpush.msra.mxu3 %v960_v26 }
 0x19b   :  { %425 = vmatpush.msra.mxu3 %v969_v28 }
 0x19d   :  { %426 = vmatpush.msra.mxu3 %v979_v30 }
 0x19f   :  { %427 = vmatpush.msra.mxu3 %v998_v34 }
 0x1a1   :  { %428 = vmatpush.msra.mxu3 %v1011_v37 }
 0x1a3   :  { %429 = vmatpush.msra.mxu3 %v1020_v39 }
 0x1a5   :  { %430 = vmatpush.msra.mxu3 %v1030_v41 }
 0x1a7   :  { %431 = vmatpush.msra.mxu3 %v1044_v44 }
 0x1a9   :  { %432 = vmatpush.msra.mxu3 %v1062_v46 }
 0x1ab   :  { %433 = vmatpush.msra.mxu3 %v1068_v47 }
 0x20f   :  { %v303_v24 = vpop.f32.mrf.mxu3 }
 0x210   :  { %v306_v25 = vadd.f32 %v303_v24, %v185_v23  ;;  %v607_v23 = vld [vmem:[%s1402_s4 + $0x68] sm:$0xff]  ;;  %v606_v24 = vld [vmem:[%s1402_s4 + $0x60] sm:$0xff] }
 0x211   :  { %616 = vmatpush.msra.mxu0 %v607_v23 }
 0x212   :  { %725 = vtanh.f32 %v306_v25  ;;  %v605_v25 = vld [vmem:[%s1402_s4 + $0x58] sm:$0xff] }
 0x213   :  { %617 = vmatpush.msra.mxu0 %v606_v24 }
 0x215   :  { %618 = vmatpush.msra.mxu0 %v605_v25 }
 0x218   :  { %v726_v27 = vpop.eup %725 }
 0x219   :  { %324 = vmatmul.f32.vlgmr.msrb.gmra.mxu1 %v726_v27  ;;  %v604_v27 = vld [vmem:[%s1402_s4 + $0x50] sm:$0xff] }
 0x21a   :  { %440 = vmatpush.msrb.mxu1 %v878_v8  ;;  %619 = vmatpush.msra.mxu0 %v604_v27 }
 0x21c   :  { %441 = vmatpush.msrb.mxu1 %v887_v10  ;;  %620 = vmatpush.msra.mxu0 %v603_v29 }
 0x21e   :  { %442 = vmatpush.msrb.mxu1 %v893_v11 }
 0x220   :  { %443 = vmatpush.msrb.mxu1 %v915_v16 }
 0x222   :  { %444 = vmatpush.msrb.mxu1 %v924_v18 }
 0x224   :  { %445 = vmatpush.msrb.mxu1 %v934_v20 }
 0x226   :  { %446 = vmatpush.msrb.mxu1 %v960_v26 }
 0x228   :  { %447 = vmatpush.msrb.mxu1 %v969_v28 }
 0x22a   :  { %448 = vmatpush.msrb.mxu1 %v979_v30 }
 0x22c   :  { %449 = vmatpush.msrb.mxu1 %v998_v34 }
 0x22e   :  { %450 = vmatpush.msrb.mxu1 %v1011_v37 }
 0x230   :  { %451 = vmatpush.msrb.mxu1 %v1020_v39 }
 0x232   :  { %452 = vmatpush.msrb.mxu1 %v1030_v41 }
 0x234   :  { %453 = vmatpush.msrb.mxu1 %v1044_v44 }
 0x236   :  { %454 = vmatpush.msrb.mxu1 %v1062_v46 }
 0x238   :  { %455 = vmatpush.msrb.mxu1 %v1068_v47 }
 0x296   :  { %v325_v32 = vpop.f32.mrf.mxu1 }
 0x297   :  { %v328_v33 = vadd.f32 %v325_v32, %v188_v31  ;;  %v602_v31 = vld [vmem:[%s1402_s4 + $0x40] sm:$0xff]  ;;  %v601_v32 = vld [vmem:[%s1402_s4 + $0x38] sm:$0xff] }
 0x298   :  { %621 = vmatpush.msra.mxu0 %v602_v31 }
 0x299   :  { %727 = vtanh.f32 %v328_v33  ;;  %v600_v33 = vld [vmem:[%s1402_s4 + $0x30] sm:$0xff] }
 0x29a   :  { %622 = vmatpush.msra.mxu0 %v601_v32 }
 0x29c   :  { %623 = vmatpush.msra.mxu0 %v600_v33 }
 0x29f   :  { %v728_v35 = vpop.eup %727 }
 0x2a0   :  { %346 = vmatmul.f32.vlgmr.msrb.gmra.mxu2 %v728_v35  ;;  %v599_v35 = vld [vmem:[%s1402_s4 + $0x28] sm:$0xff] }
 0x2a1   :  { %462 = vmatpush.msrb.mxu2 %v878_v8  ;;  %624 = vmatpush.msra.mxu0 %v599_v35 }
 0x2a3   :  { %463 = vmatpush.msrb.mxu2 %v887_v10 }
 0x2a5   :  { %464 = vmatpush.msrb.mxu2 %v893_v11 }
 0x2a7   :  { %465 = vmatpush.msrb.mxu2 %v915_v16 }
 0x2a9   :  { %466 = vmatpush.msrb.mxu2 %v924_v18 }
 0x2ab   :  { %467 = vmatpush.msrb.mxu2 %v934_v20 }
 0x2ad   :  { %468 = vmatpush.msrb.mxu2 %v960_v26 }
 0x2af   :  { %469 = vmatpush.msrb.mxu2 %v969_v28 }
 0x2b1   :  { %470 = vmatpush.msrb.mxu2 %v979_v30 }
 0x2b3   :  { %471 = vmatpush.msrb.mxu2 %v998_v34 }
 0x2b5   :  { %472 = vmatpush.msrb.mxu2 %v1011_v37 }
 0x2b7   :  { %473 = vmatpush.msrb.mxu2 %v1020_v39 }
 0x2b9   :  { %474 = vmatpush.msrb.mxu2 %v1030_v41 }
 0x2bb   :  { %475 = vmatpush.msrb.mxu2 %v1044_v44 }
 0x2bd   :  { %476 = vmatpush.msrb.mxu2 %v1062_v46 }
 0x2bf   :  { %477 = vmatpush.msrb.mxu2 %v1068_v47 }
 0x323   :  { %v347_v40 = vpop.f32.mrf.mxu2 }
 0x324   :  { %v350_v42 = vadd.f32 %v347_v40, %v191_v38 }
 0x326   :  { %729 = vtanh.f32 %v350_v42 }
 0x32c   :  { %v730_v43 = vpop.eup %729 }
 0x32d   :  { %368 = vmatmul.f32.vlgmr.msrb.gmra.mxu3 %v730_v43  ;;  %v598_v43 = vld [vmem:[%s1402_s4 + $0x20] sm:$0xff] }
 0x32e   :  { %484 = vmatpush.msrb.mxu3 %v878_v8  ;;  %625 = vmatpush.msra.mxu0 %v598_v43 }
 0x330   :  { %485 = vmatpush.msrb.mxu3 %v887_v10  ;;  %626 = vmatpush.msra.mxu0 %v597_v45 }
 0x332   :  { %486 = vmatpush.msrb.mxu3 %v893_v11 }
 0x334   :  { %487 = vmatpush.msrb.mxu3 %v915_v16 }
 0x336   :  { %488 = vmatpush.msrb.mxu3 %v924_v18 }
 0x338   :  { %489 = vmatpush.msrb.mxu3 %v934_v20 }
 0x33a   :  { %490 = vmatpush.msrb.mxu3 %v960_v26 }
 0x33c   :  { %491 = vmatpush.msrb.mxu3 %v969_v28 }
 0x33e   :  { %492 = vmatpush.msrb.mxu3 %v979_v30 }
 0x340   :  { %493 = vmatpush.msrb.mxu3 %v998_v34 }
 0x342   :  { %494 = vmatpush.msrb.mxu3 %v1011_v37 }
 0x344   :  { %495 = vmatpush.msrb.mxu3 %v1020_v39 }
 0x346   :  { %496 = vmatpush.msrb.mxu3 %v1030_v41 }
 0x348   :  { %497 = vmatpush.msrb.mxu3 %v1044_v44 }
 0x34a   :  { %498 = vmatpush.msrb.mxu3 %v1062_v46 }
 0x34c   :  { %499 = vmatpush.msrb.mxu3 %v1068_v47 }
 0x3b0   :  { %v369_v49 = vpop.f32.mrf.mxu3 }
 0x3b1   :  { %v372_v50 = vadd.f32 %v369_v49, %v194_v48  ;;  %v596_v48 = vld [vmem:[%s1402_s4 + $0x10] sm:$0xff]  ;;  %v595_v49 = vld [vmem:[%s1402_s4 + $0x8] sm:$0xff] }
 0x3b2   :  { %627 = vmatpush.msra.mxu0 %v596_v48 }
 0x3b3   :  { %731 = vtanh.f32 %v372_v50  ;;  %v594_v50 = vld [vmem:[%s1402_s4] sm:$0xff]  ;;  %s812_s4 = smov [#allocation4]  }
 0x3b4   :  { %628 = vmatpush.msra.mxu0 %v595_v49  ;;  %s663_s10 = sshll.u32 %s812_s4, 4  ;;  %s664_s10 = int_to_ptr.vmem [resolvable:$true] %s663_s10 }
 0x3b6   :  { %629 = vmatpush.msra.mxu0 %v594_v50 }
 0x3b9   :  { %v732_v51 = vpop.eup %731 }
 0x3ba   :  { %390 = vmatmul.f32.vlgmr.msra.gmra.mxu1 %v732_v51 }
 0x3bb   :  { %528 = vmatpush.msra.mxu1 %v878_v8 }
 0x3bd   :  { %529 = vmatpush.msra.mxu1 %v887_v10 }
 0x3bf   :  { %530 = vmatpush.msra.mxu1 %v893_v11 }
 0x3c1   :  { %531 = vmatpush.msra.mxu1 %v915_v16 }
 0x3c3   :  { %532 = vmatpush.msra.mxu1 %v924_v18 }
 0x3c5   :  { %533 = vmatpush.msra.mxu1 %v934_v20 }
 0x3c7   :  { %534 = vmatpush.msra.mxu1 %v960_v26 }
 0x3c9   :  { %535 = vmatpush.msra.mxu1 %v969_v28 }
 0x3cb   :  { %536 = vmatpush.msra.mxu1 %v979_v30 }
 0x3cd   :  { %537 = vmatpush.msra.mxu1 %v998_v34 }
 0x3cf   :  { %538 = vmatpush.msra.mxu1 %v1011_v37 }
 0x3d1   :  { %539 = vmatpush.msra.mxu1 %v1020_v39 }
 0x3d3   :  { %540 = vmatpush.msra.mxu1 %v1030_v41 }
 0x3d5   :  { %541 = vmatpush.msra.mxu1 %v1044_v44 }
 0x3d7   :  { %542 = vmatpush.msra.mxu1 %v1062_v46 }
 0x3d9   :  { %543 = vmatpush.msra.mxu1 %v1068_v47 }
 0x437   :  { %v391_v54 = vpop.f32.mrf.mxu1 }
 0x438   :  { %v394_v55 = vadd.f32 %v391_v54, %v197_v53 }
 0x43a   :  { %733 = vtanh.f32 %v394_v55  ;;  %v720_v55 = vld [vmem:[%s1403_s5] ss:$0 sm:$0xff]  ;;  %s813_s5 = smov [#allocation2]  }
 0x43b   :  { %s652_s14 = sshll.u32 %s813_s5, 4  ;;  %s653_s14 = int_to_ptr.vmem [resolvable:$true] %s652_s14 }
 0x440   :  { %v734_v56 = vpop.eup %733 }
 0x441   :  { %412 = vmatmul.f32.vlgmr.msra.gmra.mxu2 %v734_v56 }
 0x442   :  { %550 = vmatpush.msra.mxu2 %v878_v8 }
 0x444   :  { %551 = vmatpush.msra.mxu2 %v887_v10 }
 0x446   :  { %552 = vmatpush.msra.mxu2 %v893_v11 }
 0x448   :  { %553 = vmatpush.msra.mxu2 %v915_v16 }
 0x44a   :  { %554 = vmatpush.msra.mxu2 %v924_v18 }
 0x44c   :  { %555 = vmatpush.msra.mxu2 %v934_v20 }
 0x44e   :  { %556 = vmatpush.msra.mxu2 %v960_v26 }
 0x450   :  { %557 = vmatpush.msra.mxu2 %v969_v28 }
 0x452   :  { %558 = vmatpush.msra.mxu2 %v979_v30 }
 0x454   :  { %559 = vmatpush.msra.mxu2 %v998_v34 }
 0x456   :  { %560 = vmatpush.msra.mxu2 %v1011_v37 }
 0x458   :  { %561 = vmatpush.msra.mxu2 %v1020_v39 }
 0x45a   :  { %562 = vmatpush.msra.mxu2 %v1030_v41 }
 0x45c   :  { %563 = vmatpush.msra.mxu2 %v1044_v44 }
 0x45e   :  { %564 = vmatpush.msra.mxu2 %v1062_v46 }
 0x460   :  { %565 = vmatpush.msra.mxu2 %v1068_v47 }
 0x4c4   :  { %v413_v59 = vpop.f32.mrf.mxu2 }
 0x4c5   :  { %v416_v60 = vadd.f32 %v413_v59, %v200_v58 }
 0x4c7   :  { %735 = vtanh.f32 %v416_v60 }
 0x4cd   :  { %v736_v61 = vpop.eup %735 }
 0x4ce   :  { %434 = vmatmul.f32.vlgmr.msra.gmra.mxu3 %v736_v61 }
 0x4cf   :  { %572 = vmatpush.msra.mxu3 %v878_v8  ;;  %v202_v8 = vpop.f32.mrf.mxu0 }
 0x4d1   :  { %573 = vmatpush.msra.mxu3 %v887_v10  ;;  %v203_v10 = vadd.f32 %v1195_v5, %v202_v8 }
 0x4d3   :  { %574 = vmatpush.msra.mxu3 %v893_v11 }
 0x4d5   :  { %575 = vmatpush.msra.mxu3 %v915_v16 }
 0x4d7   :  { %576 = vmatpush.msra.mxu3 %v924_v18 }
 0x4d9   :  { %577 = vmatpush.msra.mxu3 %v934_v20  ;;  %v205_v20 = vpop.f32.mrf.mxu0 }
 0x4db   :  { %578 = vmatpush.msra.mxu3 %v960_v26  ;;  %v206_v26 = vadd.f32 %v1195_v5, %v205_v20 }
 0x4dd   :  { %579 = vmatpush.msra.mxu3 %v969_v28 }
 0x4df   :  { %580 = vmatpush.msra.mxu3 %v979_v30 }
 0x4e1   :  { %581 = vmatpush.msra.mxu3 %v998_v34 }
 0x4e3   :  { %582 = vmatpush.msra.mxu3 %v1011_v37  ;;  %v208_v37 = vpop.f32.mrf.mxu0 }
 0x4e5   :  { %583 = vmatpush.msra.mxu3 %v1020_v39  ;;  %v209_v39 = vadd.f32 %v1195_v5, %v208_v37 }
 0x4e7   :  { %584 = vmatpush.msra.mxu3 %v1030_v41 }
 0x4e9   :  { %585 = vmatpush.msra.mxu3 %v1044_v44 }
 0x4eb   :  { %586 = vmatpush.msra.mxu3 %v1062_v46 }
 0x4ed   :  { %587 = vmatpush.msra.mxu3 %v1068_v47  ;;  %v211_v47 = vpop.f32.mrf.mxu0 }
 0x4ee   :  { %v212_v62 = vadd.f32 %v1195_v5, %v211_v47 }
 0x4f5   :  { %v214_v2 = vpop.f32.mrf.mxu0 }
 0x4f6   :  { %v215_v7 = vadd.f32 %v1195_v5, %v214_v2 }
 0x4fd   :  { %v217_v3 = vpop.f32.mrf.mxu0 }
 0x4fe   :  { %v218_v14 = vadd.f32 %v1195_v5, %v217_v3 }
 0x505   :  { %v220_v4 = vpop.f32.mrf.mxu0 }
 0x506   :  { %v221_v36 = vadd.f32 %v1195_v5, %v220_v4 }
 0x50d   :  { %v223_v6 = vpop.f32.mrf.mxu0 }
 0x50e   :  { %v224_v51 = vadd.f32 %v1195_v5, %v223_v6 }
 0x551   :  { %v435_v11 = vpop.f32.mrf.mxu3 }
 0x552   :  { %v438_v16 = vadd.f32 %v435_v11, %v203_v10 }
 0x554   :  { %737 = vtanh.f32 %v438_v16 }
 0x55a   :  { %v738_v18 = vpop.eup %737 }
 0x55b   :  { %456 = vmatmul.f32.vlgmr.msrb.gmra.mxu1 %v738_v18 }
 0x5d8   :  { %v457_v28 = vpop.f32.mrf.mxu1 }
 0x5d9   :  { %v460_v30 = vadd.f32 %v457_v28, %v206_v26 }
 0x5db   :  { %739 = vtanh.f32 %v460_v30 }
 0x5e1   :  { %v740_v34 = vpop.eup %739 }
 0x5e2   :  { %478 = vmatmul.f32.vlgmr.msrb.gmra.mxu2 %v740_v34 }
 0x665   :  { %v479_v41 = vpop.f32.mrf.mxu2 }
 0x666   :  { %v482_v44 = vadd.f32 %v479_v41, %v209_v39 }
 0x668   :  { %741 = vtanh.f32 %v482_v44 }
 0x66e   :  { %v742_v46 = vpop.eup %741 }
 0x66f   :  { %500 = vmatmul.f32.vlgmr.msrb.gmra.mxu3 %v742_v46 }
 0x6f2   :  { %v501_v63 = vpop.f32.mrf.mxu3 }
 0x6f3   :  { %v504_v0 = vadd.f32 %v501_v63, %v212_v62 }
 0x6f5   :  { %743 = vtanh.f32 %v504_v0 }
 0x6fb   :  { %v744_v1 = vpop.eup %743 }
 0x6fc   :  { %522 = vmatmul.f32.vlgmr.msrb.gmra.mxu0 %v744_v1 }
 0x779   :  { %v523_v9 = vpop.f32.mrf.mxu0 }
 0x77a   :  { %v526_v12 = vadd.f32 %v523_v9, %v215_v7 }
 0x77c   :  { %745 = vtanh.f32 %v526_v12 }
 0x782   :  { %v746_v13 = vpop.eup %745 }
 0x783   :  { %544 = vmatmul.f32.vlgmr.msra.gmra.mxu1 %v746_v13 }
 0x800   :  { %v545_v15 = vpop.f32.mrf.mxu1 }
 0x801   :  { %v548_v17 = vadd.f32 %v545_v15, %v218_v14 }
 0x803   :  { %747 = vtanh.f32 %v548_v17 }
 0x809   :  { %v748_v19 = vpop.eup %747 }
 0x80a   :  { %566 = vmatmul.f32.vlgmr.msra.gmra.mxu2 %v748_v19 }
 0x88d   :  { %v567_v38 = vpop.f32.mrf.mxu2 }
 0x88e   :  { %v570_v40 = vadd.f32 %v567_v38, %v221_v36 }
 0x890   :  { %749 = vtanh.f32 %v570_v40 }
 0x896   :  { %v750_v42 = vpop.eup %749 }
 0x897   :  { %588 = vmatmul.f32.vlgmr.msra.gmra.mxu3 %v750_v42 }
 0x91a   :  { %v589_v52 = vpop.f32.mrf.mxu3 }
 0x91b   :  { %v592_v53 = vadd.f32 %v589_v52, %v224_v51 }
 0x91d   :  { %751 = vtanh.f32 %v592_v53 }
 0x923   :  { %v752_v54 = vpop.eup %751 }
 0x924   :  { %646 = vst [vmem:[#allocation4] sm:$0xff] %v752_v54  ;;  %630 = vmatmul.f32.vlgmr.msra.gmra.mxu0 %v752_v54 }
 0x925   :  { %668 = dma.vmem_to_hbm [thread:$0]  %s664_s10, 128, %s666_s13, [#allocation5]  }
 0x9a1   :  { %v631_v56 = vpop.f32.mrf.mxu0 }
 0x9a2   :  { %v632_v57 = vadd.f32 %v720_v55, %v631_v56 }
 0x9a4   :  { %634 = vmax.xlane.f32.xlu1 %v632_v57 }
 0xa17   :  { %v635_v58 = vpop.xlane.xlu1 %634 }
 0xa18   :  { %v636_v59 = vsub.f32 %v632_v57, %v635_v58 }
 0xa1a   :  { %v637_v60 = vmul.f32 1.442695, %v636_v59 }
 0xa1c   :  { %753 = vpow2.f32 %v637_v60 }
 0xa22   :  { %v754_v61 = vpop.eup %753 }
 0xa23   :  { %639 = vadd.xlane.f32.xlu2 %v754_v61 }
 0xa96   :  { %v640_v5 = vpop.xlane.xlu2 %639 }
 0xa97   :  { %755 = vlog2.f32 %v640_v5 }
 0xa9d   :  { %v756_v8 = vpop.eup %755 }
 0xa9e   :  { %v642_v10 = vmul.f32 0.6931472, %v756_v8 }
 0xaa0   :  { %v643_v11 = vadd.f32 %v642_v10, %v635_v58 }
 0xaa2   :  { %v644_v16 = vsub.f32 %v632_v57, %v643_v11 }
 0xaa4   :  { %645 = vst [vmem:[#allocation2] sm:$0xff] %v644_v16 }
 0xaa5   :  { %657 = dma.vmem_to_hbm [thread:$0]  %s653_s14, 128, %s655_s17, [#allocation3]  }
 0xaa6   :  { %805 = dma.done.wait [#allocation3], 128  }
 0xaa7   :  { %806 = vsyncadd [#allocation3], 4294967168 }
 0xaa8   :  { %807 = dma.done.wait [#allocation5], 128  }
 0xaa9   :  { %808 = vsyncadd [#allocation5], 4294967168 }
 0xaaa   :  { %677 = vsyncpa [#allocation3], 1 }
 0xaab   :  { %678 = vsyncpa [#allocation5], 1 }

</bundles_post_ra>
